<compile_context>
chip_gen: v7x
topology: tpu7x:2x2x1
jax: 0.10.0
libtpu: 0.0.40
codegen_flags: <defaults>
</compile_context>

<pallas_src>
import jax
import jax.numpy as jnp
from jax.experimental import pallas as pl
from jax.experimental.pallas import tpu as pltpu

N_EMBED = 128          # n_embed (lane-dense: multiple of 128)
DROPOUT = 0.2          # nn.Dropout(p) -- identity in eval mode


# ---------------------------------------------------------------------------
# Kernel: one (TM, C) tile of rows through Linear -> ReLU -> Linear
# ---------------------------------------------------------------------------
def ffn_kernel(x_ref, w1_ref, b1_ref, w2_ref, b2_ref, o_ref):
    x = x_ref[...]                                     # (TM, C) bf16
    # First Linear: bf16 MXU inputs, f32 accumulation, f32 bias add.
    h = jnp.dot(x, w1_ref[...],
                preferred_element_type=jnp.float32) + b1_ref[...]
    h = jnp.maximum(h, 0.0)                            # ReLU
    # Second Linear.
    out = jnp.dot(h.astype(jnp.bfloat16), w2_ref[...],
                  preferred_element_type=jnp.float32) + b2_ref[...]
    # TODO(synk): training-mode stochastic dropout (pltpu.prng_seed +
    # prng_random_bits mask scaled by 1/(1-p)) not implemented; nn.Dropout is
    # identity in eval mode, which is what we mirror here.
    o_ref[...] = out.astype(o_ref.dtype)


def _const_spec(shape):
    """Full-array block whose index_map is constant (loaded once, reused)."""
    nd = len(shape)
    return pl.BlockSpec(shape, lambda i, _nd=nd: (0,) * _nd)


def _round_up(v, m):
    return ((v + m - 1) // m) * m


# ---------------------------------------------------------------------------
# Wrapper: (B, T, C) -> (B, T, C), mirrors FeedForward.forward (eval mode)
# ---------------------------------------------------------------------------
def feed_forward(x, params, *, tile_m=1024):
    B, T, C = x.shape
    M = B * T
    x2 = x.reshape(M, C)

    # Row-tile size: multiple of 16 (bf16 sublane packing). No wrapper-side
    # padding; Pallas masks the ragged last block via cdiv grid.
    tm = min(tile_m, _round_up(M, 16))
    # Keep >= 2 grid steps when M permits so megacore (v7x) gets both cores busy.
    if pl.cdiv(M, tm) < 2 and M >= 32:
        tm = _round_up(pl.cdiv(M, 2), 16)
    grid_m = pl.cdiv(M, tm)

    w1, b1, w2, b2 = params['w1'], params['b1'], params['w2'], params['b2']
    H = w1.shape[1]

    compiler_kwargs = dict(dimension_semantics=("parallel",))
    # Rough VMEM budget: double-buffered bf16 in/out tiles, f32 hidden temp,
    # bf16 weights, f32 biases. Raise the scoped limit only if we exceed the
    # default (large tm), with headroom but capped below v7x's 64 MiB/TC.
    vmem_est = (2 * 2 * tm * C * 2) + (tm * H * 4) + 2 * (C * H + H * C) + 4 * (H + C)
    if vmem_est > 24 * 1024 * 1024:
        compiler_kwargs["vmem_limit_bytes"] = min(int(vmem_est * 2), 60 * 1024 * 1024)

    out = pl.pallas_call(
        ffn_kernel,
        grid=(grid_m,),
        in_specs=[
            pl.BlockSpec((tm, C), lambda i: (i, 0)),   # activations (bf16)
            _const_spec(w1.shape),                     # (C, 4C) bf16
            _const_spec(b1.shape),                     # (1, 4C) f32
            _const_spec(w2.shape),                     # (4C, C) bf16
            _const_spec(b2.shape),                     # (1, C) f32
        ],
        out_specs=pl.BlockSpec((tm, C), lambda i: (i, 0)),
        out_shape=jax.ShapeDtypeStruct((M, C), x.dtype),
        compiler_params=pltpu.CompilerParams(**compiler_kwargs),
    )(x2, w1, b1, w2, b2)

    return out.reshape(B, T, C)


# ---------------------------------------------------------------------------
# Pure-JAX reference (f32) for correctness
# ---------------------------------------------------------------------------
def reference_forward(x, params):
    xf = x.astype(jnp.float32)
    w1 = params['w1'].astype(jnp.float32)
    w2 = params['w2'].astype(jnp.float32)
    h = jnp.maximum(jnp.einsum('btc,ch->bth', xf, w1) + params['b1'], 0.0)
    return jnp.einsum('bth,hc->btc', h, w2) + params['b2']


if __name__ == "__main__":
    key = jax.random.PRNGKey(0)
    kx, k1, k2, k3, k4 = jax.random.split(key, 5)

    B, T, C = 2, 16, N_EMBED
    H = 4 * C

    # Activations carried in bf16 end-to-end (as an upstream layer would emit).
    x = jax.random.normal(kx, (B, T, C), jnp.float32).astype(jnp.bfloat16)
    s1 = 1.0 / jnp.sqrt(jnp.float32(C))
    s2 = 1.0 / jnp.sqrt(jnp.float32(H))
    params = {
        'w1': (s1 * jax.random.normal(k1, (C, H))).astype(jnp.bfloat16),
        'b1': (s1 * jax.random.normal(k2, (1, H))).astype(jnp.float32),
        'w2': (s2 * jax.random.normal(k3, (H, C))).astype(jnp.bfloat16),
        'b2': (s2 * jax.random.normal(k4, (1, C))).astype(jnp.float32),
    }

    out = jax.block_until_ready(feed_forward(x, params))
    ref = jax.block_until_ready(reference_forward(x, params))

    assert out.shape == (B, T, C)
    assert out.dtype == jnp.bfloat16
    max_err = float(jnp.max(jnp.abs(out.astype(jnp.float32) - ref)))
    assert max_err < 6e-2, f"mismatch vs reference: {max_err}"

    print("KERNEL_OK")
</pallas_src>

<mosaic_0001>
module attributes {stable_mosaic.version = 11 : i64} {
  func.func @ffn_kernel(%arg0: i32, %arg1: memref<16x128xbf16, #tpu.memory_space<vmem>>, %arg2: memref<128x512xbf16, #tpu.memory_space<vmem>>, %arg3: memref<1x512xf32, #tpu.memory_space<vmem>>, %arg4: memref<512x128xbf16, #tpu.memory_space<vmem>>, %arg5: memref<1x128xf32, #tpu.memory_space<vmem>>, %arg6: memref<16x128xbf16, #tpu.memory_space<vmem>>) attributes {dimension_semantics = [#tpu.dimension_semantics<parallel>], iteration_bounds = array<i64: 2>, scalar_prefetch = 0 : i64, scratch_operands = 0 : i64, tpu.core_type = #tpu.core_type<tc>, window_params = [{transform_indices = @transform_0, window_bounds = array<i64: 16, 128>}, {pipeline_mode = #tpu.pipeline_mode<synchronous>, transform_indices = @transform_1, window_bounds = array<i64: 128, 512>}, {pipeline_mode = #tpu.pipeline_mode<synchronous>, transform_indices = @transform_2, window_bounds = array<i64: 1, 512>}, {pipeline_mode = #tpu.pipeline_mode<synchronous>, transform_indices = @transform_3, window_bounds = array<i64: 512, 128>}, {pipeline_mode = #tpu.pipeline_mode<synchronous>, transform_indices = @transform_4, window_bounds = array<i64: 1, 128>}, {transform_indices = @transform_5, window_bounds = array<i64: 16, 128>}]} {
    %c0 = arith.constant 0 : index
    %c0_0 = arith.constant 0 : index
    %0 = vector.load %arg1[%c0, %c0_0] : memref<16x128xbf16, #tpu.memory_space<vmem>>, vector<16x128xbf16>
    %c0_1 = arith.constant 0 : index
    %c0_2 = arith.constant 0 : index
    %1 = vector.load %arg2[%c0_1, %c0_2] : memref<128x512xbf16, #tpu.memory_space<vmem>>, vector<128x512xbf16>
    %cst = arith.constant dense<0.000000e+00> : vector<16x512xf32>
    %2 = tpu.matmul %0, %1, %cst {dimension_numbers = #tpu.dot_dimension_numbers<[1], [0], [0], [1], [0, 0, 1, 1], [], []>} : vector<16x128xbf16>, vector<128x512xbf16>, vector<16x512xf32> -> vector<16x512xf32>
    %c0_3 = arith.constant 0 : index
    %c0_4 = arith.constant 0 : index
    %3 = vector.load %arg3[%c0_3, %c0_4] : memref<1x512xf32, #tpu.memory_space<vmem>>, vector<1x512xf32>
    %4 = vector.broadcast %3 : vector<1x512xf32> to vector<16x512xf32>
    %5 = arith.addf %2, %4 : vector<16x512xf32>
    %cst_5 = arith.constant 0.000000e+00 : f32
    %6 = vector.broadcast %cst_5 : f32 to vector<16x512xf32>
    %7 = arith.maximumf %5, %6 : vector<16x512xf32>
    %8 = arith.truncf %7 : vector<16x512xf32> to vector<16x512xbf16>
    %c0_6 = arith.constant 0 : index
    %c0_7 = arith.constant 0 : index
    %9 = vector.load %arg4[%c0_6, %c0_7] : memref<512x128xbf16, #tpu.memory_space<vmem>>, vector<512x128xbf16>
    %cst_8 = arith.constant dense<0.000000e+00> : vector<16x128xf32>
    %10 = tpu.matmul %8, %9, %cst_8 {dimension_numbers = #tpu.dot_dimension_numbers<[1], [0], [0], [1], [0, 0, 1, 1], [], []>} : vector<16x512xbf16>, vector<512x128xbf16>, vector<16x128xf32> -> vector<16x128xf32>
    %c0_9 = arith.constant 0 : index
    %c0_10 = arith.constant 0 : index
    %11 = vector.load %arg5[%c0_9, %c0_10] : memref<1x128xf32, #tpu.memory_space<vmem>>, vector<1x128xf32>
    %12 = vector.broadcast %11 : vector<1x128xf32> to vector<16x128xf32>
    %13 = arith.addf %10, %12 : vector<16x128xf32>
    %14 = arith.truncf %13 : vector<16x128xf32> to vector<16x128xbf16>
    %c0_11 = arith.constant 0 : index
    %c0_12 = arith.constant 0 : index
    %15 = vector.load %arg6[%c0_11, %c0_12] : memref<16x128xbf16, #tpu.memory_space<vmem>>, vector<16x128xbf16>
    tpu.vector_store %arg6[%c0_11, %c0_12], %14 {strides = array<i32>} : memref<16x128xbf16, #tpu.memory_space<vmem>>, vector<16x128xbf16>,
    return
  }
  func.func @transform_0(%arg0: i32) -> (i32, i32) {
    %c0_i32 = arith.constant 0 : i32
    %c0_i32_0 = arith.constant 0 : i32
    return %arg0, %c0_i32 : i32, i32
  }
  func.func @transform_1(%arg0: i32) -> (i32, i32) {
    %c0_i32 = arith.constant 0 : i32
    %c0_i32_0 = arith.constant 0 : i32
    %c0_i32_1 = arith.constant 0 : i32
    return %c0_i32, %c0_i32_0 : i32, i32
  }
  func.func @transform_2(%arg0: i32) -> (i32, i32) {
    %c0_i32 = arith.constant 0 : i32
    %c0_i32_0 = arith.constant 0 : i32
    %c0_i32_1 = arith.constant 0 : i32
    return %c0_i32, %c0_i32_0 : i32, i32
  }
  func.func @transform_3(%arg0: i32) -> (i32, i32) {
    %c0_i32 = arith.constant 0 : i32
    %c0_i32_0 = arith.constant 0 : i32
    %c0_i32_1 = arith.constant 0 : i32
    return %c0_i32, %c0_i32_0 : i32, i32
  }
  func.func @transform_4(%arg0: i32) -> (i32, i32) {
    %c0_i32 = arith.constant 0 : i32
    %c0_i32_0 = arith.constant 0 : i32
    %c0_i32_1 = arith.constant 0 : i32
    return %c0_i32, %c0_i32_0 : i32, i32
  }
  func.func @transform_5(%arg0: i32) -> (i32, i32) {
    %c0_i32 = arith.constant 0 : i32
    %c0_i32_0 = arith.constant 0 : i32
    return %arg0, %c0_i32 : i32, i32
  }
}

</mosaic_0001>

<bundles_post_ra>
// kernel: tpu_custom_call.1
= control target key start
LH: loop header
LB: loop body
LE: loop exit
PB: predicated region body
PF: predicated region fallthrough
CT: control target
= control target key end

     0   :  { %10 = vsyncpa [#allocation3], 0  ;;  %s1802_s0 = inlined_call_operand.hbm [shape: bf16[32,128], index: 0, kind: input, shape index: {}]   ;;  %s1803_s1 = inlined_call_operand.hbm [shape: bf16[128,512], index: 1, kind: input, shape index: {}]   ;;  %s1804_s2 = inlined_call_operand.vmem [shape: f32[1,512], index: 2, kind: input, shape index: {}]   ;;  %s1805_s3 = inlined_call_operand.hbm [shape: bf16[512,128], index: 3, kind: input, shape index: {}]   ;;  %s1806_s4 = inlined_call_operand.vmem [shape: f32[1,128], index: 4, kind: input, shape index: {}]   ;;  %s1807_s5 = inlined_call_operand.hbm [shape: bf16[32,128], index: 5, kind: output, shape index: {}]  }
   0x1   :  { %12 = vsyncpa [#allocation3 + $0x1], 0 }
   0x2   :  { %13 = vsyncpa [#allocation6], 0 }
   0x3   :  { %14 = vsyncpa [#allocation4], 0 }
   0x4   :  { %16 = vsyncpa [#allocation4 + $0x1], 0  ;;  %s1549_s18 = smov 0   ;;  %s1551_s19 = smov 0  }
   0x5   :  { %s1553_s20 = smov 0   ;;  %s1555_s21 = smov 0  }
   0x6 LB: > { %s1570_s22 = sadd.s32 4294967295, %s1506_s21   ;;  %s1056_s23 = sadd.s32 4294967294, %s1506_s21   ;;  %s1506_s21 = sphi %s1555_s21, %s1827_s21   ;;  %s1502_s20 = sphi %s1553_s20, %s1826_s20   ;;  %s1498_s19 = sphi %s1551_s19, %s1825_s19   ;;  %s1494_s18 = sphi %s1549_s18, %s1824_s18  }
   0x7   : > { %p42_p0 = scmp.ne.s32.totalorder %s1498_s19, %s1494_s18  ;;  %p1808_p1 = scmp.eq.s32.totalorder %s1570_s22, 0 }
   0x8   : > { %p156_p3 = scmp.eq.s32.totalorder %s1056_s23, 1  ;;  %p1057_p5 = scmp.ge.s32.totalorder %s1506_s21, 1 }
   0x9   : > { %p1579_p4 = por %p1808_p1, %p42_p0  ;;  %p163_p7 = scmp.lt.s32.totalorder %s1506_s21, 3 }
   0xa   : > { %p1584_p6 = por %p156_p3, %p42_p0  ;;  %s1508_s27 = smov [#allocation5]  }
   0xb   : > { %s1811_s24 = scalar_select %p1579_p4, 1, 0 }
   0xc   : > { %s1812_s25 = scalar_select %p1584_p6, 1, 0 }
   0xd   : > { %p1589_p8 = pnand %p1057_p5, %p163_p7  ;;  %s175_s28 = sshll.u32 %s1508_s27, 4  ;;  %s1593_s28 = int_to_ptr.vmem [resolvable:$true] %s175_s28 }
   0xe   : > { %s1509_s30 = smov [#allocation7]   ;;  %s1350_s9 = scalar_lea.hbm %s1803_s1, 4096 }
   0xf   : > { %p1207_p9 = pneg %p1589_p8  ;;  %s191_s6 = sshll.u32 %s1509_s30, 4  ;;  %s1604_s6 = int_to_ptr.vmem [resolvable:$true] %s191_s6 }
  0x10   : > { %p1351_p12 = scmp.ne.s32.totalorder %s1803_s1, %s1350_s9  ;;  %p1357_p5 = scmp.lt.u32.totalorder %s1350_s9, %s1803_s1 }
  0x11   : > { %p1600_p11 = pnand %p1207_p9, %p1808_p1 }
  0x13   : > { %p1352_p13 = pneg %p1600_p11 }
  0x15   : > { %p1353_p0 = pnand %p1352_p13, %p1351_p12 }
  0x17   : > { %p1354_p3 = pneg %p1353_p0 }
  0x19   : > { %p1359_p7 = pnand %p1357_p5, %p1354_p3 }
  0x1b   : > { %1362 = shalt.err (!%p1359_p7)
}
  0x1c   : > { %s1363_s14 = scalar_lea.vmem %s1593_s28, 4096  ;;  %p1371_p2 = scmp.lt.s32.totalorder %s1593_s28, %s1593_s28 }
  0x1d   : > { %p1364_p9 = scmp.ne.s32.totalorder %s1593_s28, %s1363_s14  ;;  %p1372_p12 = scmp.lt.s32.totalorder %s1363_s14, %s1363_s14 }
  0x1f   : > { %p1366_p10 = pnand %p1364_p9, %p1352_p13  ;;  %p1373_p0 = por %p1372_p12, %p1371_p2 }
  0x21   : > { %p1367_p1 = pneg %p1366_p10 }
  0x23   : > { %p1374_p6 = pnand %p1373_p0, %p1367_p1 }
  0x25   : > { %1377 = shalt.err (!%p1374_p6)
}
  0x26   : > { %s1510_s15 = smov 256   ;;  %s1511_s16 = smov 16  }
  0x27   : > { %1210 = dma.hbm_to_vmem [thread:$0]  (!%p1600_p11), %s1803_s1, 4096, %s1593_s28, [#allocation6], %s1510_s15, %s1510_s15, %s1511_s16  }
  0x28   : > { %s1378_s7 = scalar_lea.hbm %s1805_s3, 4096 }
  0x29   : > { %p1379_p2 = scmp.ne.s32.totalorder %s1805_s3, %s1378_s7  ;;  %p1385_p10 = scmp.lt.u32.totalorder %s1378_s7, %s1805_s3 }
  0x2b   : > { %p1381_p1 = pnand %p1379_p2, %p1352_p13 }
  0x2d   : > { %p1382_p6 = pneg %p1381_p1 }
  0x2f   : > { %p1387_p3 = pnand %p1385_p10, %p1382_p6 }
  0x31   : > { %1390 = shalt.err (!%p1387_p3)
}
  0x32   : > { %s1391_s28 = scalar_lea.vmem %s1604_s6, 4096  ;;  %p1399_p12 = scmp.lt.s32.totalorder %s1604_s6, %s1604_s6 }
  0x33   : > { %p1392_p5 = scmp.ne.s32.totalorder %s1604_s6, %s1391_s28  ;;  %p1400_p0 = scmp.lt.s32.totalorder %s1391_s28, %s1391_s28 }
  0x35   : > { %p1394_p7 = pnand %p1392_p5, %p1352_p13  ;;  %p1401_p2 = por %p1400_p0, %p1399_p12 }
  0x37   : > { %p1395_p9 = pneg %p1394_p7 }
  0x39   : > { %p1402_p1 = pnand %p1401_p2, %p1395_p9 }
  0x3b   : > { %1405 = shalt.err (!%p1402_p1)
}
  0x3c   : > { %s1512_s12 = smov 64   ;;  %s1513_s13 = smov 4  }
  0x3d   : > { %1213 = dma.hbm_to_vmem [thread:$0]  (!%p1600_p11), %s1805_s3, 4096, %s1604_s6, [#allocation6], %s1512_s12, %s1512_s12, %s1513_s13  }
  0x3e   : > { %s1662_s16 = sadd.s32 1, %s1506_s21   ;;  %s29_s23 = sadd.s32 1, %s1502_s20 }
  0x3f   : > { %s26_s17 = ssub.s32 %s1506_s21, %s1662_s16  ;;  %p36_p6 = scmp.ne.s32.totalorder %s1502_s20, %s1498_s19 }
  0x40   : > { %p27_p13 = scmp.eq.s32.totalorder %s26_s17, 0  ;;  %p37_p10 = scmp.eq.s32.totalorder %s1506_s21, 0 }
  0x41   : > { %p1815_p5 = scmp.eq.s32.totalorder %s1570_s22, 1  ;;  %p1224_p9 = scmp.lt.s32.totalorder %s1506_s21, 2 }
  0x42   : > { %s1671_s27 = scalar_select %p27_p13, %s1502_s20, %s29_s23  }
  0x43   : > { %p38_p3 = por %p37_p10, %p36_p6  ;;  %p1675_p7 = por %p1815_p5, %p36_p6 }
  0x44   : > { %s208_s30 = sand.u32 1, %s1502_s20   ;;  %s1142_s6 = sshll.u32 %s1506_s21, 7 }
  0x45   : > { %s1816_s29 = scalar_select %p1675_p7, 1, 0 }
  0x46   : > { %s1061_s7 = sshll.u32 %s208_s30, 3  ;;  %s1685_s10 = scalar_lea.hbm %s1802_s0, %s1142_s6 }
  0x47   : > { %s212_s11 = scalar_lea.vmem [#allocation2], %s1061_s7  ;;  %p1689_p11 = pnand %p1224_p9, %p38_p3 }
  0x48   : > { %s219_s28 = sshll.u32 %s212_s11, 4  ;;  %s1693_s15 = scalar_lea.sflag [#allocation3], %s208_s30  ;;  %s1687_s28 = int_to_ptr.vmem [resolvable:$true] %s219_s28 }
  0x49   : > { %s1406_s17 = scalar_lea.hbm %s1685_s10, 128  ;;  %p1408_p0 = pneg %p1689_p11 }
  0x4a   : > { %p1407_p12 = scmp.ne.s32.totalorder %s1685_s10, %s1406_s17  ;;  %s1411_s6 = scalar_lea.hbm %s1802_s0, 256 }
  0x4b   : > { %p1412_p13 = scmp.lt.u32.totalorder %s1685_s10, %s1802_s0  ;;  %p1413_p6 = scmp.lt.u32.totalorder %s1411_s6, %s1406_s17 }
  0x4c   : > { %p1409_p2 = pnand %p1408_p0, %p1407_p12  ;;  %p1415_p3 = scmp.lt.u32.totalorder %s1406_s17, %s1685_s10 }
  0x4d   : > { %p1414_p10 = por %p1413_p6, %p1412_p13 }
  0x4e   : > { %p1410_p1 = pneg %p1409_p2 }
  0x4f   : > { %p1416_p5 = por %p1415_p3, %p1414_p10 }
  0x51   : > { %p1417_p9 = pnand %p1416_p5, %p1410_p1 }
  0x53   : > { %1420 = shalt.err (!%p1417_p9)
}
  0x54   : > { %s1421_s30 = scalar_lea.vmem %s1687_s28, 128  ;;  %s1514_s11 = smov [#allocation2]  }
  0x55   : > { %p1422_p12 = scmp.ne.s32.totalorder %s1687_s28, %s1421_s30  ;;  %s1426_s23 = sshll.u32 %s1514_s11, 4  ;;  %s1427_s23 = int_to_ptr.vmem [resolvable:$false] %s1426_s23 }
  0x56   : > { %s1428_s7 = scalar_lea.vmem %s1427_s23, 256  ;;  %p1429_p4 = scmp.lt.s32.totalorder %s1687_s28, %s1427_s23 }
  0x57   : > { %p1424_p2 = pnand %p1422_p12, %p1408_p0  ;;  %p1430_p13 = scmp.lt.s32.totalorder %s1428_s7, %s1421_s30 }
  0x59   : > { %p1425_p7 = pneg %p1424_p2  ;;  %p1431_p6 = por %p1430_p13, %p1429_p4 }
  0x5b   : > { %p1432_p10 = pnand %p1431_p6, %p1425_p7 }
  0x5d   : > { %1435 = shalt.err (!%p1432_p10)
}
  0x5e   : > { %1217 = dma.hbm_to_vmem [thread:$0]  (!%p1689_p11), %s1685_s10, 128, %s1687_s28, %s1693_s15, %s1512_s12, %s1512_s12, %s1513_s13  }
  0x5f   : > { %231 = sbr.rel (%p1589_p8) target bundleno = 600 (0x258), region = 40  ;;  %s1727_s17 = sand.u32 (!%p1589_p8), 1, %s1498_s19  }
  0x60   : > { %s1065_s6 = sshll.u32 (!%p1589_p8), %s1727_s17, 3  ;;  %s234_s8 = scalar_lea.sflag (!%p1589_p8), [#allocation3], %s1727_s17 }
  0x61   : > { %s1733_s14 = scalar_lea.vmem (!%p1589_p8), [#allocation2], %s1065_s6  ;;  %p1818_p4 = scmp.ne.s32.totalorder (!%p1589_p8), %s1811_s24, 0 }
  0x66   : > { %1481 = dma.done.wait (%p1818_p4), %s234_s8, 128  }
  0x67   : > { %1483 = vsyncadd (%p1818_p4), %s234_s8, 4294967168  ;;  %p1819_p7 = scmp.eq.s32.totalorder %s1570_s22, 0 }
  0x69   : > { %1485 = dma.done.wait (%p1819_p7), [#allocation6], 8192   ;;  %p1820_p8 = pmov %p1819_p7 }
  0x6a   : > { %v1515_v0 = vmov 0   ;;  %v1269_v1 = vld [vmem:[#allocation5 + $0x4] ss:$16 sps:$4 sm:$0xff]   ;;  %v1271_v2 = vld [vmem:[#allocation5 + $0xc] ss:$16 sps:$4 sm:$0xff]   ;;  %s1145_s10 = sshll.u32 %s1570_s22, 7 }
  0x6b   : > { %1487 = vsyncadd (%p1820_p8), [#allocation6], 4294959104  ;;  %529 = vmatprep.mubr.bf16.mxu0 %v1515_v0  ;;  %572 = vmatprep.mubr.bf16.mxu1 %v1515_v0  ;;  %v1273_v3 = vld [vmem:[#allocation5] ss:$16 sps:$4 sm:$0xff]   ;;  %v1274_v4 = vld [vmem:[#allocation5 + $0x8] ss:$16 sps:$4 sm:$0xff]   ;;  %s1756_s11 = scalar_lea.hbm %s1807_s5, %s1145_s10 }
  0x6c   : > { %497 = vmatprep.subr.bf16.mxu0 %v1269_v1  ;;  %540 = vmatprep.subr.bf16.mxu1 %v1271_v2  ;;  %v1275_v5 = vld [vmem:[#allocation5 + $0x24] ss:$16 sps:$4 sm:$0xff]   ;;  %v1277_v6 = vld [vmem:[#allocation5 + $0x2c] ss:$16 sps:$4 sm:$0xff]   ;;  %v1279_v7 = vld [vmem:[#allocation5 + $0x20] ss:$16 sps:$4 sm:$0xff]   ;;  %v311_v2 = vlaneseq }
  0x6d   : > { %498 = vmatpush1.bf16.msra.mxu0 %v1273_v3  ;;  %541 = vmatpush1.bf16.msra.mxu1 %v1274_v4  ;;  %v1280_v8 = vld [vmem:[#allocation5 + $0x28] ss:$16 sps:$4 sm:$0xff]   ;;  %v1281_v9 = vld [vmem:[#allocation5 + $0x44] ss:$16 sps:$4 sm:$0xff]   ;;  %v1283_v10 = vld [vmem:[#allocation5 + $0x4c] ss:$16 sps:$4 sm:$0xff]  }
  0x6e   : > { %499 = vmatprep.subr.bf16.mxu0 %v1275_v5  ;;  %542 = vmatprep.subr.bf16.mxu1 %v1277_v6  ;;  %v1285_v11 = vld [vmem:[#allocation5 + $0x40] ss:$16 sps:$4 sm:$0xff]   ;;  %v1286_v12 = vld [vmem:[#allocation5 + $0x48] ss:$16 sps:$4 sm:$0xff]   ;;  %v1287_v13 = vld [vmem:[#allocation5 + $0x64] ss:$16 sps:$4 sm:$0xff]  }
  0x6f   : > { %v1289_v14 = vld [vmem:[#allocation5 + $0x6c] ss:$16 sps:$4 sm:$0xff]   ;;  %v1291_v15 = vld [vmem:[#allocation5 + $0x60] ss:$16 sps:$4 sm:$0xff]   ;;  %v1292_v16 = vld [vmem:[#allocation5 + $0x68] ss:$16 sps:$4 sm:$0xff]  }
  0x70   : > { %v1293_v17 = vld [vmem:[#allocation5 + $0x84] ss:$16 sps:$4 sm:$0xff]   ;;  %v1295_v18 = vld [vmem:[#allocation5 + $0x8c] ss:$16 sps:$4 sm:$0xff]   ;;  %v1297_v19 = vld [vmem:[#allocation5 + $0x80] ss:$16 sps:$4 sm:$0xff]  }
  0x71   : > { %500 = vmatpush1.bf16.msra.mxu0 %v1279_v7  ;;  %543 = vmatpush1.bf16.msra.mxu1 %v1280_v8  ;;  %v1298_v20 = vld [vmem:[#allocation5 + $0x88] ss:$16 sps:$4 sm:$0xff]   ;;  %v1299_v21 = vld [vmem:[#allocation5 + $0xa4] ss:$16 sps:$4 sm:$0xff]   ;;  %v1301_v22 = vld [vmem:[#allocation5 + $0xac] ss:$16 sps:$4 sm:$0xff]  }
  0x72   : > { %501 = vmatprep.subr.bf16.mxu0 %v1281_v9  ;;  %544 = vmatprep.subr.bf16.mxu1 %v1283_v10  ;;  %v1303_v23 = vld [vmem:[#allocation5 + $0xa0] ss:$16 sps:$4 sm:$0xff]   ;;  %v1304_v24 = vld [vmem:[#allocation5 + $0xa8] ss:$16 sps:$4 sm:$0xff]   ;;  %v1305_v25 = vld [vmem:[#allocation5 + $0xc4] ss:$16 sps:$4 sm:$0xff]  }
  0x73   : > { %v1307_v26 = vld [vmem:[#allocation5 + $0xcc] ss:$16 sps:$4 sm:$0xff]   ;;  %v1309_v27 = vld [vmem:[#allocation5 + $0xc0] ss:$16 sps:$4 sm:$0xff]   ;;  %v1310_v28 = vld [vmem:[#allocation5 + $0xc8] ss:$16 sps:$4 sm:$0xff]  }
  0x74   : > { %v1311_v29 = vld [vmem:[#allocation5 + $0xe4] ss:$16 sps:$4 sm:$0xff]   ;;  %v1313_v30 = vld [vmem:[#allocation5 + $0xec] ss:$16 sps:$4 sm:$0xff]   ;;  %v1315_v31 = vld [vmem:[#allocation5 + $0xe0] ss:$16 sps:$4 sm:$0xff]  }
  0x75   : > { %502 = vmatpush1.bf16.msra.mxu0 %v1285_v11  ;;  %545 = vmatpush1.bf16.msra.mxu1 %v1286_v12  ;;  %v1316_v32 = vld [vmem:[#allocation5 + $0xe8] ss:$16 sps:$4 sm:$0xff]   ;;  %v1318_v33 = vld [vmem:[#allocation7 + $0x40] sm:$0xff]   ;;  %v1326_v42 = vld [vmem:[#allocation7 + $0x50] sm:$0xff]   ;;  %v312_v3 = vshrl.u32 %v311_v2, 7  ;;  %s271_s28 = scalar_lea.vmem [#allocation8], %s1065_s6 }
  0x76   : > { %503 = vmatprep.subr.bf16.mxu0 %v1287_v13  ;;  %546 = vmatprep.subr.bf16.mxu1 %v1289_v14  ;;  %v1317_v34 = vld [vmem:[%s1733_s14] sm:$0xff]   ;;  %v1319_v35 = vld [vmem:[#allocation7 + $0xc0] sm:$0xff]   ;;  %v1322_v38 = vld [vmem:[#allocation7 + $0x48] sm:$0xff]   ;;  %s964_s15 = sshll.u32 %s271_s28, 4  ;;  %s951_s23 = scalar_lea.sflag [#allocation4], %s1727_s17  ;;  %s1758_s15 = int_to_ptr.vmem [resolvable:$true] %s964_s15 }
  0x77   : > { %v1320_v36 = vld [vmem:[#allocation7] sm:$0xff]   ;;  %v1323_v39 = vld [vmem:[#allocation7 + $0xc8] sm:$0xff]   ;;  %v1327_v43 = vld [vmem:[#allocation7 + $0xd0] sm:$0xff]   ;;  %v313_v4 = vsub.s32 0, %v312_v3  ;;  %v321_v5 = vsub.s32 2, %v312_v3  ;;  %v317_v7 = vsub.s32 1, %v312_v3 }
  0x78   : > { %v1321_v37 = vld [vmem:[#allocation7 + $0x80] sm:$0xff]   ;;  %v1324_v40 = vld [vmem:[#allocation7 + $0x8] sm:$0xff]   ;;  %v1328_v44 = vld [vmem:[#allocation7 + $0x10] sm:$0xff]   ;;  %v325_v8 = vsub.s32 3, %v312_v3  ;;  %s1436_s7 = scalar_lea.vmem %s1758_s15, 128  ;;  %p1821_p0 = scmp.ne.s32.totalorder %s1816_s29, 0 }
  0x79   : > { %504 = vmatpush1.bf16.msra.mxu0 %v1291_v15  ;;  %547 = vmatpush1.bf16.msra.mxu1 %v1292_v16  ;;  %v1325_v41 = vld [vmem:[#allocation7 + $0x88] sm:$0xff]   ;;  %v1329_v45 = vld [vmem:[#allocation7 + $0x90] sm:$0xff]   ;;  %v1330_v46 = vld [vmem:[#allocation7 + $0x58] sm:$0xff]   ;;  %p1437_p11 = scmp.ne.s32.totalorder %s1758_s15, %s1436_s7  ;;  %s1516_s22 = smov [#allocation8]  }
  0x7a   : > { %505 = vmatprep.subr.bf16.mxu0 %v1293_v17  ;;  %548 = vmatprep.subr.bf16.mxu1 %v1295_v18  ;;  %v1331_v47 = vld [vmem:[#allocation7 + $0xd8] sm:$0xff]   ;;  %v1334_v50 = vld [vmem:[#allocation7 + $0x60] sm:$0xff]   ;;  %v1338_v54 = vld [vmem:[#allocation7 + $0x68] sm:$0xff]   ;;  %s1440_s6 = sshll.u32 %s1516_s22, 4  ;;  %s1441_s6 = int_to_ptr.vmem [resolvable:$false] %s1440_s6 }
  0x7b   : > { %v1332_v48 = vld [vmem:[#allocation7 + $0x18] sm:$0xff]   ;;  %v1335_v51 = vld [vmem:[#allocation7 + $0xe0] sm:$0xff]   ;;  %v1339_v55 = vld [vmem:[#allocation7 + $0xe8] sm:$0xff]   ;;  %p1438_p1 = pnand %p1437_p11, %p1821_p0  ;;  %s1442_s8 = scalar_lea.vmem %s1441_s6, 256 }
  0x7c   : > { %v1333_v49 = vld [vmem:[#allocation7 + $0x98] sm:$0xff]   ;;  %v1336_v52 = vld [vmem:[#allocation7 + $0x20] sm:$0xff]   ;;  %v1340_v56 = vld [vmem:[#allocation7 + $0x28] sm:$0xff]   ;;  %p1443_p5 = scmp.lt.s32.totalorder %s1758_s15, %s1441_s6  ;;  %p1444_p9 = scmp.lt.s32.totalorder %s1442_s8, %s1436_s7 }
  0x7d   : > { %506 = vmatpush1.bf16.msra.mxu0 %v1297_v19  ;;  %549 = vmatpush1.bf16.msra.mxu1 %v1298_v20  ;;  %v1337_v53 = vld [vmem:[#allocation7 + $0xa0] sm:$0xff]   ;;  %v1341_v57 = vld [vmem:[#allocation7 + $0xa8] sm:$0xff]   ;;  %v1342_v58 = vld [vmem:[#allocation7 + $0x70] sm:$0xff]   ;;  %p1439_p3 = pneg %p1438_p1 }
  0x7e   : > { %507 = vmatprep.subr.bf16.mxu0 %v1299_v21  ;;  %550 = vmatprep.subr.bf16.mxu1 %v1301_v22  ;;  %v1343_v59 = vld [vmem:[#allocation7 + $0xf0] sm:$0xff]   ;;  %v1346_v62 = vld [vmem:[#allocation7 + $0x78] sm:$0xff]   ;;  %p1445_p12 = por %p1444_p9, %p1443_p5 }
  0x7f   : > { %v1344_v60 = vld [vmem:[#allocation7 + $0x30] sm:$0xff]   ;;  %v1347_v63 = vld [vmem:[#allocation7 + $0xf8] sm:$0xff]  }
  0x80   : > { %v1345_v61 = vld [vmem:[#allocation7 + $0xb0] sm:$0xff]   ;;  %v1348_v0 = vld [vmem:[#allocation7 + $0x38] sm:$0xff]   ;;  %p1446_p2 = pnand %p1445_p12, %p1439_p3 }
  0x81   : > { %508 = vmatpush1.bf16.msra.mxu0 %v1303_v23  ;;  %551 = vmatpush1.bf16.msra.mxu1 %v1304_v24  ;;  %v1349_v1 = vld [vmem:[#allocation7 + $0xb8] sm:$0xff]   ;;  %v309_v6 = vld [vmem:[%s1804_s2] sm:$0xf] }
  0x82   : > { %509 = vmatprep.subr.bf16.mxu0 %v1305_v25  ;;  %552 = vmatprep.subr.bf16.mxu1 %v1307_v26  ;;  %v314_v9 = vrot.slane %v309_v6, %v313_v4  ;;  %v322_v10 = vrot.slane %v309_v6, %v321_v5  ;;  %v318_v11 = vrot.slane %v309_v6, %v317_v7 }
  0x83   : > { %v326_v12 = vrot.slane %v309_v6, %v325_v8 }
  0x85   : > { %510 = vmatpush1.bf16.msra.mxu0 %v1309_v27  ;;  %553 = vmatpush1.bf16.msra.mxu1 %v1310_v28 }
  0x86   : > { %511 = vmatprep.subr.bf16.mxu0 %v1311_v29  ;;  %554 = vmatprep.subr.bf16.mxu1 %v1313_v30 }
  0x89   : > { %512 = vmatpush1.bf16.msra.mxu0 %v1315_v31  ;;  %555 = vmatpush1.bf16.msra.mxu1 %v1316_v32 }
  0x8a   : > { %1151 = vmatprep.subr.bf16.mxu0 %v1318_v33  ;;  %1173 = vmatprep.subr.bf16.mxu1 %v1319_v35 }
  0x8c   : > { %530 = vmatmul.mubr.bf16.vlgmr.msra.gmra.mrb[0].mxu0 %v1317_v34  ;;  %573 = vmatmul.mubr.bf16.vlgmr.msra.gmra.mrb[0].mxu1 %v1317_v34 }
  0x8d   : > { %1152 = vmatpush3.bf16.msra.mxu0 %v1320_v36  ;;  %1174 = vmatpush3.bf16.msra.mxu1 %v1321_v37 }
  0x8e   : > { %1153 = vmatprep.subr.bf16.mxu0 %v1322_v38  ;;  %1175 = vmatprep.subr.bf16.mxu1 %v1323_v39 }
  0x91   : > { %1154 = vmatpush3.bf16.msra.mxu0 %v1324_v40  ;;  %1176 = vmatpush3.bf16.msra.mxu1 %v1325_v41 }
  0x92   : > { %1155 = vmatprep.subr.bf16.mxu0 %v1326_v42  ;;  %1177 = vmatprep.subr.bf16.mxu1 %v1327_v43  ;;  %v1102_v43 = vld [vmem:[%s1806_s4] ss:$0 sm:$0xff] }
  0x95   : > { %1156 = vmatpush3.bf16.msra.mxu0 %v1328_v44  ;;  %1178 = vmatpush3.bf16.msra.mxu1 %v1329_v45 }
  0x96   : > { %1157 = vmatprep.subr.bf16.mxu0 %v1330_v46  ;;  %1179 = vmatprep.subr.bf16.mxu1 %v1331_v47 }
  0x99   : > { %1158 = vmatpush3.bf16.msra.mxu0 %v1332_v48  ;;  %1180 = vmatpush3.bf16.msra.mxu1 %v1333_v49 }
  0x9a   : > { %1159 = vmatprep.subr.bf16.mxu0 %v1334_v50  ;;  %1181 = vmatprep.subr.bf16.mxu1 %v1335_v51 }
  0x9d   : > { %1160 = vmatpush3.bf16.msra.mxu0 %v1336_v52  ;;  %1182 = vmatpush3.bf16.msra.mxu1 %v1337_v53 }
  0x9e   : > { %1161 = vmatprep.subr.bf16.mxu0 %v1338_v54  ;;  %1183 = vmatprep.subr.bf16.mxu1 %v1339_v55 }
  0xa1   : > { %1162 = vmatpush3.bf16.msra.mxu0 %v1340_v56  ;;  %1184 = vmatpush3.bf16.msra.mxu1 %v1341_v57 }
  0xa2   : > { %1163 = vmatprep.subr.bf16.mxu0 %v1342_v58  ;;  %1185 = vmatprep.subr.bf16.mxu1 %v1343_v59 }
  0xa5   : > { %1164 = vmatpush3.bf16.msra.mxu0 %v1344_v60  ;;  %1186 = vmatpush3.bf16.msra.mxu1 %v1345_v61 }
  0xa6   : > { %1165 = vmatprep.subr.bf16.mxu0 %v1346_v62  ;;  %1187 = vmatprep.subr.bf16.mxu1 %v1347_v63 }
  0xa9   : > { %1166 = vmatpush3.bf16.msra.mxu0 %v1348_v0  ;;  %1188 = vmatpush3.bf16.msra.mxu1 %v1349_v1 }
 0x15f   : > { %v531_v13 = vpop.f32.mrb[0].mxu0  ;;  %v574_v14 = vpop.f32.mrb[0].mxu1 }
 0x160   : > { %v532_v15 = vadd.f32 %v531_v13, %v314_v9  ;;  %v575_v16 = vadd.f32 %v574_v14, %v322_v10  ;;  %v533_v17 = vpop.f32.mrb[1].mxu0  ;;  %v576_v18 = vpop.f32.mrb[1].mxu1 }
 0x161   : > { %v534_v19 = vadd.f32 %v533_v17, %v318_v11  ;;  %v577_v20 = vadd.f32 %v576_v18, %v326_v12  ;;  %v535_v21 = vpop.f32.mrb[2].mxu0  ;;  %v578_v22 = vpop.f32.mrb[2].mxu1 }
 0x162   : > { %v585_v23 = vmax.f32 %v575_v16, 0.0  ;;  %v536_v24 = vadd.f32 %v535_v21, %v314_v9  ;;  %v579_v25 = vadd.f32 %v578_v22, %v322_v10  ;;  %v537_v26 = vpop.f32.mrb[3].mxu0  ;;  %v580_v27 = vpop.f32.mrb[3].mxu1  ;;  %v583_v31 = vmax.f32 %v532_v15, 0.0 }
 0x163   : > { %v586_v28 = vmax.f32 %v577_v20, 0.0  ;;  %v538_v29 = vadd.f32 %v537_v26, %v318_v11  ;;  %v581_v30 = vadd.f32 %v580_v27, %v326_v12  ;;  %v584_v34 = vmax.f32 %v534_v19, 0.0 }
 0x164   : > { %v587_v32 = vmax.f32 %v536_v24, 0.0  ;;  %v589_v33 = vmax.f32 %v579_v25, 0.0 }
 0x165   : > { %v588_v35 = vmax.f32 %v538_v29, 0.0  ;;  %v590_v36 = vmax.f32 %v581_v30, 0.0 }
 0x166   : > { %v591_v37 = vpack.c.bf16 %v587_v32, %v583_v31  ;;  %v593_v38 = vpack.c.bf16 %v589_v33, %v585_v23 }
 0x167   : > { %v592_v39 = vpack.c.bf16 %v588_v35, %v584_v34  ;;  %v594_v40 = vpack.c.bf16 %v590_v36, %v586_v28 }
 0x169   : > { %890 = vmatprep.mubr.bf16.mxu0 %v592_v39  ;;  %931 = vmatprep.mubr.bf16.mxu1 %v594_v40 }
 0x16a   : > { %891 = vmatmul.mubr.bf16.vlgmr.msra.gmra.mrb[4].mxu0 %v591_v37  ;;  %932 = vmatmul.mubr.bf16.vlgmr.msra.gmra.mrb[4].mxu1 %v593_v38 }
 0x23d   : > { %v1167_v41 = vpop.f32.mrb[4].mxu0  ;;  %v1189_v42 = vpop.f32.mrb[4].mxu1 }
 0x23e   : > { %v1168_v44 = vpop.f32.mrb[5].mxu0  ;;  %v1190_v45 = vpop.f32.mrb[5].mxu1 }
 0x23f   : > { %v1169_v46 = vadd.f32 %v1168_v44, %v1167_v41  ;;  %v1191_v47 = vadd.f32 %v1190_v45, %v1189_v42  ;;  %v1170_v48 = vpop.f32.mrb[6].mxu0  ;;  %v1192_v49 = vpop.f32.mrb[6].mxu1 }
 0x240   : > { %v1171_v50 = vpop.f32.mrb[7].mxu0  ;;  %v1193_v51 = vpop.f32.mrb[7].mxu1 }
 0x241   : > { %v893_v52 = vadd.f32 %v1169_v46, %v1102_v43  ;;  %v1172_v53 = vadd.f32 %v1171_v50, %v1170_v48  ;;  %v1194_v54 = vadd.f32 %v1193_v51, %v1192_v49 }
 0x243   : > { %v934_v55 = vadd.f32 %v1191_v47, %v893_v52  ;;  %v896_v56 = vadd.f32 %v1172_v53, %v1102_v43 }
 0x245   : > { %v937_v57 = vadd.f32 %v1194_v54, %v896_v56 }
 0x247   : > { %v1149_v58 = vpack.c.bf16 %v937_v57, %v934_v55 }
 0x249   : > { %1150 = vst [vmem:[%s271_s28] sm:$0xff] %v1149_v58  }
 0x24a   : > { %1449 = shalt.err (!%p1446_p2)
}
 0x24b   : > { %s1450_s14 = scalar_lea.hbm %s1756_s11, 128  ;;  %s1454_s12 = scalar_lea.hbm %s1807_s5, 256 }
 0x24c   : > { %p1451_p13 = scmp.ne.s32.totalorder %s1756_s11, %s1450_s14  ;;  %p1455_p4 = scmp.lt.u32.totalorder %s1756_s11, %s1807_s5 }
 0x24d   : > { %p1456_p7 = scmp.lt.u32.totalorder %s1454_s12, %s1450_s14  ;;  %p1458_p11 = scmp.lt.u32.totalorder %s1450_s14, %s1756_s11 }
 0x24e   : > { %p1452_p6 = pnand %p1451_p13, %p1821_p0 }
 0x24f   : > { %p1457_p8 = por %p1456_p7, %p1455_p4 }
 0x250   : > { %p1453_p10 = pneg %p1452_p6 }
 0x251   : > { %p1459_p1 = por %p1458_p11, %p1457_p8 }
 0x253   : > { %p1460_p3 = pnand %p1459_p1, %p1453_p10 }
 0x255   : > { %1463 = shalt.err (!%p1460_p3)
}
 0x256   : > { %s1517_s28 = smov 64   ;;  %s1518_s9 = smov 4  }
 0x257   : > { %1205 = dma.vmem_to_hbm [thread:$0]  (%p1821_p0), %s1758_s15, 128, %s1756_s11, %s951_s23, %s1517_s28, %s1517_s28, %s1518_s9  }
 0x258 PF: > { %s979_s30 = sand.u32 1, %s1494_s18   ;;  %p1822_p5 = scmp.ne.s32.totalorder %s1812_s25, 0 }
 0x259   : > { %p1823_p9 = scmp.ge.s32.totalorder %s1506_s21, 2  ;;  %s980_s7 = scalar_lea.sflag [#allocation4], %s979_s30 }
 0x25b   : > { %p1219_p12 = pnand %p1823_p9, %p1822_p5 }
 0x25d   : > { %1489 = dma.done.wait (!%p1219_p12), %s980_s7, 128  }
 0x25e   : > { %1491 = vsyncadd (!%p1219_p12), %s980_s7, 4294967168  ;;  %p19_p2 = scmp.ge.s32.totalorder %s1662_s16, 4   ;;  %s1824_s18 = smov %s1498_s19 }
 0x25f   : > { %s1825_s19 = smov %s1502_s20  ;;  %s1826_s20 = smov %s1671_s27 }
 0x260   : > { %s1827_s21 = smov %s1662_s16  ;;  %21 = sbr.rel (!%p19_p2) target bundleno = 6 (0x6), region = 93 }
 0x267   :  { %985 = vsyncpa [#allocation3], 1 }
 0x268   :  { %987 = vsyncpa [#allocation3 + $0x1], 1 }
 0x269   :  { %988 = vsyncpa [#allocation6], 1 }
 0x26a   :  { %989 = vsyncpa [#allocation4], 1 }
 0x26b   :  { %991 = vsyncpa [#allocation4 + $0x1], 1 }

</bundles_post_ra>
